<compile_context>
chip_gen: v6e
topology: v6e:2x2x1
jax: 0.10.0
libtpu: 0.0.40
codegen_flags: <defaults>
</compile_context>

<pallas_src>
import functools

import numpy as np
import jax
import jax.numpy as jnp
from jax.experimental import pallas as pl
from jax.experimental.pallas import tpu as pltpu


def _pad_to(v, m):
    return ((v + m - 1) // m) * m


def _cdiv(a, b):
    return -(-a // b)


def _vmem_capacity_bytes():
    try:
        return int(pltpu.get_tpu_info().vmem_capacity_bytes)
    except Exception:
        return 64 << 20          # conservative (v7x-sized) fallback


def _fused_mlp_kernel(*refs, n_layers, x_resident):
    # refs = x, w1, b1, (w_i, b_i) for layers 2..n, out, acc_scratch
    x_ref, w1_ref, b1_ref = refs[0], refs[1], refs[2]
    rest = refs[3:3 + 2 * (n_layers - 1)]
    o_ref = refs[3 + 2 * (n_layers - 1)]
    acc_ref = refs[-1]

    k = pl.program_id(0)

    @pl.when(k == 0)
    def _():
        acc_ref[...] = jnp.zeros_like(acc_ref)

    # Layer-1 partial matmul for this K tile (bf16 inputs, f32 MXU accumulate).
    if x_resident:
        x_blk = x_ref[k]          # x resident as (k_tiles, B_pad, tk)
    else:
        x_blk = x_ref[...]        # x streamed as (B_pad, tk) blocks
    acc_ref[...] += jnp.dot(x_blk, w1_ref[...],
                            preferred_element_type=jnp.float32)

    @pl.when(k == pl.num_programs(0) - 1)
    def _():
        h = acc_ref[...] + b1_ref[...]          # f32 bias, broadcast over batch
        if n_layers > 1:
            h = jnp.maximum(h, 0.0)             # ReLU after every hidden layer
        # Remaining (tiny) layers: fully resident in VMEM, done in the epilogue.
        for i in range(n_layers - 1):
            w_ref = rest[2 * i]
            b_ref = rest[2 * i + 1]
            h = jnp.dot(h.astype(w_ref.dtype), w_ref[...],
                        preferred_element_type=jnp.float32)
            h = h + b_ref[...]
            if i < n_layers - 2:
                h = jnp.maximum(h, 0.0)
        o_ref[...] = h.astype(o_ref.dtype)


def init_fc_discriminator_params(key, input_dim, hidden_dims):
    """Parameter init mimicking torch.nn.Linear defaults
    (uniform(-1/sqrt(fan_in), 1/sqrt(fan_in))). Weights are [in, out]."""
    dims = [input_dim] + list(hidden_dims) + [1]
    params = []
    for i in range(len(dims) - 1):
        fan_in, fan_out = dims[i], dims[i + 1]
        key, kw, kb = jax.random.split(key, 3)
        bound = 1.0 / jnp.sqrt(jnp.float32(fan_in))
        w = jax.random.uniform(kw, (fan_in, fan_out), jnp.float32, -bound, bound)
        b = jax.random.uniform(kb, (1, fan_out), jnp.float32, -bound, bound)
        params.append((w, b))
    return params


def prepare_fc_discriminator_params(params, *, compute_dtype=jnp.bfloat16,
                                    batch_hint=2, tk=None, slab_bytes=6 << 20):
    """One-time pad + cast of the parameters into the kernel layout, plus the
    tiling plan.  Call once and reuse; do NOT call per forward."""
    tk_req = tk
    n_layers = len(params)
    D = params[0][0].shape[0]
    out_dims = [w.shape[1] for (w, _) in params]          # last is 1
    dims_pad = [_pad_to(d, 128) for d in out_dims]        # lane-dense widths
    n1_pad = dims_pad[0]
    bytes_per = np.dtype(compute_dtype).itemsize

    B_pad = _pad_to(max(int(batch_hint), 1), 8)
    d128 = _pad_to(D, 128)

    # Per-generation VMEM budget (v7x: 64 MiB physical, v5e/v6e: 128 MiB).
    vmem_cap = _vmem_capacity_bytes()
    vmem_budget = max(16 << 20, vmem_cap - (8 << 20))

    # Keep x fully resident when small (removes the per-step strided x DMA).
    x_resident = B_pad * d128 * bytes_per <= (2 << 20)

    # Fixed VMEM cost (everything except the K-streamed W1 / x slabs), assuming
    # double buffering on all auto-pipelined operands.
    fixed = B_pad * n1_pad * 4                              # f32 accumulator
    fixed += 2 * B_pad * dims_pad[-1] * 4                   # output
    fixed += 2 * 8 * n1_pad * 4                             # b1
    for i in range(1, n_layers):
        fixed += 2 * dims_pad[i - 1] * dims_pad[i] * bytes_per
        fixed += 2 * 8 * dims_pad[i] * 4
    if x_resident:
        fixed += 2 * B_pad * d128 * bytes_per

    per_k_col = 2 * n1_pad * bytes_per                      # W1 double buffer
    if not x_resident:
        per_k_col += 2 * B_pad * bytes_per                  # streamed x slab
    avail = vmem_budget - fixed - (2 << 20)                 # pipeline slack
    tk_vmem = max(128, (avail // per_k_col) // 128 * 128)
    tk_slab = max(128, (slab_bytes // (n1_pad * bytes_per)) // 128 * 128)
    tk_max = min(tk_vmem, tk_slab)
    if tk_req is not None:
        tk_max = min(tk_max, max(128, _pad_to(int(tk_req), 128)))

    # Snap tk so tk * k_tiles covers D with at most (k_tiles - 1) wasted
    # 128-lane chunks and every block obeys the (8,128) rule.
    n_chunks = _cdiv(D, 128)
    k_tiles = _cdiv(n_chunks, max(1, tk_max // 128))
    tk = _cdiv(n_chunks, k_tiles) * 128
    D_pad = tk * k_tiles

    # --- pad & cast ONCE (zero padding keeps the math identical) ---
    w1, b1 = params[0]
    w1_p = jnp.zeros((D_pad, n1_pad), compute_dtype)
    w1_p = w1_p.at[:D, :out_dims[0]].set(w1.astype(compute_dtype))
    b1_p = jnp.zeros((1, n1_pad), jnp.float32)
    b1_p = b1_p.at[:, :out_dims[0]].set(b1.astype(jnp.float32))
    rest = []
    for i in range(1, n_layers):
        w, b = params[i]
        w_p = jnp.zeros((dims_pad[i - 1], dims_pad[i]), compute_dtype)
        w_p = w_p.at[:w.shape[0], :w.shape[1]].set(w.astype(compute_dtype))
        b_p = jnp.zeros((1, dims_pad[i]), jnp.float32)
        b_p = b_p.at[:, :w.shape[1]].set(b.astype(jnp.float32))
        rest.extend([w_p, b_p])

    return dict(
        n_layers=n_layers, D=D, out_dims=out_dims, dims_pad=dims_pad,
        compute_dtype=compute_dtype, bytes_per=bytes_per,
        tk=tk, k_tiles=k_tiles, D_pad=D_pad, x_resident=x_resident,
        vmem_budget=vmem_budget,
        w1=w1_p, b1=b1_p, rest=tuple(rest),
    )


def fc_discriminator_forward(x, prep):
    """Flatten -> [Linear -> ReLU]* -> Linear(->1), as one fused pallas_call.
    `prep` comes from prepare_fc_discriminator_params (padded/cast weights)."""
    B = x.shape[0]
    x2d = x.reshape(B, -1)                      # torch.nn.Flatten
    D = prep["D"]
    assert x2d.shape[1] == D, (x2d.shape, D)

    n_layers = prep["n_layers"]
    compute_dtype = prep["compute_dtype"]
    bytes_per = prep["bytes_per"]
    tk, k_tiles, D_pad = prep["tk"], prep["k_tiles"], prep["D_pad"]
    dims_pad = prep["dims_pad"]
    n1_pad, n_out_pad = dims_pad[0], dims_pad[-1]

    B_pad = _pad_to(B, 8)
    x_resident = bool(prep["x_resident"]) and \
        (B_pad * D_pad * bytes_per <= (2 << 20))

    # Only x is padded per call (it is tiny compared to W1).
    x_flat = jnp.zeros((B_pad, D_pad), compute_dtype)
    x_flat = x_flat.at[:B, :D].set(x2d.astype(compute_dtype))
    if x_resident:
        x_p = x_flat.reshape(B_pad, k_tiles, tk).transpose(1, 0, 2)
        x_spec = pl.BlockSpec((k_tiles, B_pad, tk), lambda k: (0, 0, 0))
    else:
        x_p = x_flat
        x_spec = pl.BlockSpec((B_pad, tk), lambda k: (0, k))

    in_specs = [
        x_spec,
        pl.BlockSpec((tk, n1_pad), lambda k: (k, 0)),       # W1 (K-streamed)
        pl.BlockSpec((1, n1_pad), lambda k: (0, 0)),        # b1 (grid-invariant)
    ]
    for a in prep["rest"]:
        in_specs.append(pl.BlockSpec(tuple(a.shape), lambda k: (0, 0)))
    out_specs = pl.BlockSpec((B_pad, n_out_pad), lambda k: (0, 0))

    # --- VMEM accounting, clamped to the per-generation physical budget ---
    vmem_bytes = 2 * tk * n1_pad * bytes_per                # W1 double buffer
    vmem_bytes += 2 * (B_pad * D_pad if x_resident else B_pad * tk) * bytes_per
    vmem_bytes += B_pad * n1_pad * 4                        # f32 accumulator
    vmem_bytes += 2 * 8 * n1_pad * 4                        # b1
    for a in prep["rest"]:
        vmem_bytes += 2 * a.size * np.dtype(a.dtype).itemsize
    vmem_bytes += 2 * B_pad * n_out_pad * 4                 # output
    vmem_limit = int(min(prep["vmem_budget"],
                         int(vmem_bytes * 1.5) + (4 << 20)))

    # --- cost estimate so XLA can schedule around the custom call ---
    all_dims_pad = [D_pad] + dims_pad
    flops = 2 * B_pad * sum(all_dims_pad[i] * all_dims_pad[i + 1]
                            for i in range(n_layers))
    bytes_accessed = (x_p.size * bytes_per + prep["w1"].size * bytes_per
                      + prep["b1"].size * 4 + B_pad * n_out_pad * 4)
    for a in prep["rest"]:
        bytes_accessed += a.size * np.dtype(a.dtype).itemsize

    out_padded = pl.pallas_call(
        functools.partial(_fused_mlp_kernel, n_layers=n_layers,
                          x_resident=x_resident),
        out_shape=jax.ShapeDtypeStruct((B_pad, n_out_pad), jnp.float32),
        grid=(k_tiles,),
        in_specs=in_specs,
        out_specs=out_specs,
        scratch_shapes=[pltpu.VMEM((B_pad, n1_pad), jnp.float32)],
        compiler_params=pltpu.CompilerParams(
            dimension_semantics=("arbitrary",),      # K is a reduction axis
            vmem_limit_bytes=vmem_limit),
        cost_estimate=pl.CostEstimate(
            flops=flops, transcendentals=0, bytes_accessed=bytes_accessed),
    )(x_p, prep["w1"], prep["b1"], *prep["rest"])

    return out_padded[:B, :prep["out_dims"][-1]]


def _reference(x, params, compute_dtype):
    """Pure-JAX reference mirroring the kernel's bf16-in / f32-accumulate math."""
    B = x.shape[0]
    h = x.reshape(B, -1).astype(compute_dtype).astype(jnp.float32)
    n = len(params)
    for i, (w, b) in enumerate(params):
        wq = w.astype(compute_dtype).astype(jnp.float32)
        h = h @ wq + b.astype(jnp.float32)
        if i < n - 1:
            h = jnp.maximum(h, 0.0)
            h = h.astype(compute_dtype).astype(jnp.float32)   # mirror in-kernel cast
    return h


if __name__ == "__main__":
    key = jax.random.PRNGKey(0)
    kx, kp1, kp2, kp3 = jax.random.split(key, 4)

    # Small example: batch=2, channels=4, spatial=16x16 -> input_dim = 1024
    B, C, H, W = 2, 4, 16, 16
    input_dim = C * H * W
    x = jax.random.normal(kx, (B, C, H, W), jnp.float32)

    # Case 1: one hidden layer (Flatten -> Linear -> ReLU -> Linear(->1)).
    # A small forced tk (256) exercises the multi-step K-accumulation path with
    # the resident-x dynamic slab indexing.
    params1 = init_fc_discriminator_params(kp1, input_dim, [32])
    prep1 = prepare_fc_discriminator_params(params1, batch_hint=B, tk=256)
    out1 = jax.block_until_ready(fc_discriminator_forward(x, prep1))
    assert out1.shape == (B, 1), out1.shape
    assert out1.dtype == jnp.float32, out1.dtype
    ref1 = _reference(x, params1, jnp.bfloat16)
    assert jnp.allclose(out1, ref1, atol=1e-3, rtol=1e-3), (out1, ref1)

    # Case 2: no hidden layers (Flatten -> Linear(->1)), fully auto tiling
    # (single grid step, roofline-sized slab).
    params2 = init_fc_discriminator_params(kp2, input_dim, [])
    prep2 = prepare_fc_discriminator_params(params2, batch_hint=B)
    out2 = jax.block_until_ready(fc_discriminator_forward(x, prep2))
    assert out2.shape == (B, 1), out2.shape
    ref2 = _reference(x, params2, jnp.bfloat16)
    assert jnp.allclose(out2, ref2, atol=1e-3, rtol=1e-3), (out2, ref2)

    # Case 3: two hidden layers; also exercise the streamed (non-resident) x path.
    params3 = init_fc_discriminator_params(kp3, input_dim, [64, 32])
    prep3 = prepare_fc_discriminator_params(params3, batch_hint=B, tk=512)
    prep3["x_resident"] = False          # force the BlockSpec-tiled x path
    out3 = jax.block_until_ready(fc_discriminator_forward(x, prep3))
    assert out3.shape == (B, 1), out3.shape
    ref3 = _reference(x, params3, jnp.bfloat16)
    assert jnp.allclose(out3, ref3, atol=1e-3, rtol=1e-3), (out3, ref3)

    print("KERNEL_OK")
</pallas_src>

<mosaic_0001>
module attributes {stable_mosaic.version = 11 : i64} {
  func.func @_fused_mlp_kernel(%arg0: i32, %arg1: memref<4x8x256xbf16, #tpu.memory_space<vmem>>, %arg2: memref<256x128xbf16, #tpu.memory_space<vmem>>, %arg3: memref<1x128xf32, #tpu.memory_space<vmem>>, %arg4: memref<128x128xbf16, #tpu.memory_space<vmem>>, %arg5: memref<1x128xf32, #tpu.memory_space<vmem>>, %arg6: memref<8x128xf32, #tpu.memory_space<vmem>>, %arg7: memref<8x128xf32, #tpu.memory_space<vmem>>) attributes {dimension_semantics = [#tpu.dimension_semantics<arbitrary>], iteration_bounds = array<i64: 4>, scalar_prefetch = 0 : i64, scratch_operands = 1 : i64, tpu.core_type = #tpu.core_type<tc>, window_params = [{pipeline_mode = #tpu.pipeline_mode<synchronous>, transform_indices = @transform_0, window_bounds = array<i64: 4, 8, 256>}, {transform_indices = @transform_1, window_bounds = array<i64: 256, 128>}, {pipeline_mode = #tpu.pipeline_mode<synchronous>, transform_indices = @transform_2, window_bounds = array<i64: 1, 128>}, {pipeline_mode = #tpu.pipeline_mode<synchronous>, transform_indices = @transform_3, window_bounds = array<i64: 128, 128>}, {pipeline_mode = #tpu.pipeline_mode<synchronous>, transform_indices = @transform_4, window_bounds = array<i64: 1, 128>}, {pipeline_mode = #tpu.pipeline_mode<synchronous>, transform_indices = @transform_5, window_bounds = array<i64: 8, 128>}]} {
    %c0_i32 = arith.constant 0 : i32
    %0 = arith.cmpi eq, %arg0, %c0_i32 : i32
    %1 = arith.extui %0 : i1 to i32
    %c0_i32_0 = arith.constant 0 : i32
    %2 = arith.cmpi ne, %1, %c0_i32_0 : i32
    scf.if %2 {
      %cst_9 = arith.constant 0.000000e+00 : f32
      %14 = vector.broadcast %cst_9 : f32 to vector<8x128xf32>
      %c0_10 = arith.constant 0 : index
      %c0_11 = arith.constant 0 : index
      %15 = vector.load %arg7[%c0_10, %c0_11] : memref<8x128xf32, #tpu.memory_space<vmem>>, vector<8x128xf32>
      tpu.vector_store %arg7[%c0_10, %c0_11], %14 {strides = array<i32>} : memref<8x128xf32, #tpu.memory_space<vmem>>, vector<8x128xf32>,
    } else {
    }
    %3 = arith.index_cast %arg0 : i32 to index
    %c0 = arith.constant 0 : index
    %c0_1 = arith.constant 0 : index
    %4 = vector.load %arg1[%3, %c0, %c0_1] : memref<4x8x256xbf16, #tpu.memory_space<vmem>>, vector<1x8x256xbf16>
    %5 = vector.shape_cast %4 : vector<1x8x256xbf16> to vector<8x256xbf16>
    %c0_2 = arith.constant 0 : index
    %c0_3 = arith.constant 0 : index
    %6 = vector.load %arg7[%c0_2, %c0_3] : memref<8x128xf32, #tpu.memory_space<vmem>>, vector<8x128xf32>
    %c0_4 = arith.constant 0 : index
    %c0_5 = arith.constant 0 : index
    %7 = vector.load %arg2[%c0_4, %c0_5] : memref<256x128xbf16, #tpu.memory_space<vmem>>, vector<256x128xbf16>
    %cst = arith.constant dense<0.000000e+00> : vector<8x128xf32>
    %8 = tpu.matmul %5, %7, %cst {dimension_numbers = #tpu.dot_dimension_numbers<[1], [0], [0], [1], [0, 0, 1, 1], [], []>} : vector<8x256xbf16>, vector<256x128xbf16>, vector<8x128xf32> -> vector<8x128xf32>
    %9 = arith.addf %6, %8 : vector<8x128xf32>
    %c0_6 = arith.constant 0 : index
    %c0_7 = arith.constant 0 : index
    %10 = vector.load %arg7[%c0_6, %c0_7] : memref<8x128xf32, #tpu.memory_space<vmem>>, vector<8x128xf32>
    tpu.vector_store %arg7[%c0_6, %c0_7], %9 {strides = array<i32>} : memref<8x128xf32, #tpu.memory_space<vmem>>, vector<8x128xf32>,
    %c3_i32 = arith.constant 3 : i32
    %11 = arith.cmpi eq, %arg0, %c3_i32 : i32
    %12 = arith.extui %11 : i1 to i32
    %c0_i32_8 = arith.constant 0 : i32
    %13 = arith.cmpi ne, %12, %c0_i32_8 : i32
    scf.if %13 {
      %c0_9 = arith.constant 0 : index
      %c0_10 = arith.constant 0 : index
      %14 = vector.load %arg7[%c0_9, %c0_10] : memref<8x128xf32, #tpu.memory_space<vmem>>, vector<8x128xf32>
      %c0_11 = arith.constant 0 : index
      %c0_12 = arith.constant 0 : index
      %15 = vector.load %arg3[%c0_11, %c0_12] : memref<1x128xf32, #tpu.memory_space<vmem>>, vector<1x128xf32>
      %16 = vector.broadcast %15 : vector<1x128xf32> to vector<8x128xf32>
      %17 = arith.addf %14, %16 : vector<8x128xf32>
      %cst_13 = arith.constant 0.000000e+00 : f32
      %18 = vector.broadcast %cst_13 : f32 to vector<8x128xf32>
      %19 = arith.maximumf %17, %18 : vector<8x128xf32>
      %20 = arith.truncf %19 : vector<8x128xf32> to vector<8x128xbf16>
      %c0_14 = arith.constant 0 : index
      %c0_15 = arith.constant 0 : index
      %21 = vector.load %arg4[%c0_14, %c0_15] : memref<128x128xbf16, #tpu.memory_space<vmem>>, vector<128x128xbf16>
      %cst_16 = arith.constant dense<0.000000e+00> : vector<8x128xf32>
      %22 = tpu.matmul %20, %21, %cst_16 {dimension_numbers = #tpu.dot_dimension_numbers<[1], [0], [0], [1], [0, 0, 1, 1], [], []>} : vector<8x128xbf16>, vector<128x128xbf16>, vector<8x128xf32> -> vector<8x128xf32>
      %c0_17 = arith.constant 0 : index
      %c0_18 = arith.constant 0 : index
      %23 = vector.load %arg5[%c0_17, %c0_18] : memref<1x128xf32, #tpu.memory_space<vmem>>, vector<1x128xf32>
      %24 = vector.broadcast %23 : vector<1x128xf32> to vector<8x128xf32>
      %25 = arith.addf %22, %24 : vector<8x128xf32>
      %c0_19 = arith.constant 0 : index
      %c0_20 = arith.constant 0 : index
      %26 = vector.load %arg6[%c0_19, %c0_20] : memref<8x128xf32, #tpu.memory_space<vmem>>, vector<8x128xf32>
      tpu.vector_store %arg6[%c0_19, %c0_20], %25 {strides = array<i32>} : memref<8x128xf32, #tpu.memory_space<vmem>>, vector<8x128xf32>,
    } else {
    }
    return
  }
  func.func @transform_0(%arg0: i32) -> (i32, i32, i32) {
    %c0_i32 = arith.constant 0 : i32
    %c0_i32_0 = arith.constant 0 : i32
    %c0_i32_1 = arith.constant 0 : i32
    %c0_i32_2 = arith.constant 0 : i32
    return %c0_i32, %c0_i32_0, %c0_i32_1 : i32, i32, i32
  }
  func.func @transform_1(%arg0: i32) -> (i32, i32) {
    %c0_i32 = arith.constant 0 : i32
    %c0_i32_0 = arith.constant 0 : i32
    return %arg0, %c0_i32 : i32, i32
  }
  func.func @transform_2(%arg0: i32) -> (i32, i32) {
    %c0_i32 = arith.constant 0 : i32
    %c0_i32_0 = arith.constant 0 : i32
    %c0_i32_1 = arith.constant 0 : i32
    return %c0_i32, %c0_i32_0 : i32, i32
  }
  func.func @transform_3(%arg0: i32) -> (i32, i32) {
    %c0_i32 = arith.constant 0 : i32
    %c0_i32_0 = arith.constant 0 : i32
    %c0_i32_1 = arith.constant 0 : i32
    return %c0_i32, %c0_i32_0 : i32, i32
  }
  func.func @transform_4(%arg0: i32) -> (i32, i32) {
    %c0_i32 = arith.constant 0 : i32
    %c0_i32_0 = arith.constant 0 : i32
    %c0_i32_1 = arith.constant 0 : i32
    return %c0_i32, %c0_i32_0 : i32, i32
  }
  func.func @transform_5(%arg0: i32) -> (i32, i32) {
    %c0_i32 = arith.constant 0 : i32
    %c0_i32_0 = arith.constant 0 : i32
    %c0_i32_1 = arith.constant 0 : i32
    return %c0_i32, %c0_i32_0 : i32, i32
  }
}

</mosaic_0001>

<bundles_post_ra>
// kernel: tpu_custom_call.1
= control target key start
LH: loop header
LB: loop body
LE: loop exit
PB: predicated region body
PF: predicated region fallthrough
CT: control target
= control target key end

     0   :  { %10 = vsyncpa [#allocation4], 0  ;;  %s1241_s0 = inlined_call_operand.hbm [shape: bf16[4,8,256], index: 0, kind: input, shape index: {}]   ;;  %s1242_s1 = inlined_call_operand.hbm [shape: bf16[1024,128], index: 1, kind: input, shape index: {}]   ;;  %s1243_s2 = inlined_call_operand.vmem [shape: f32[1,128], index: 2, kind: input, shape index: {}]   ;;  %s1244_s3 = inlined_call_operand.hbm [shape: bf16[128,128], index: 3, kind: input, shape index: {}]   ;;  %s1245_s4 = inlined_call_operand.vmem [shape: f32[1,128], index: 4, kind: input, shape index: {}]   ;;  %s1246_s5 = inlined_call_operand.hbm [shape: f32[8,128], index: 5, kind: output, shape index: {}]  }
   0x1   :  { %11 = vsyncpa [#allocation7], 0 }
   0x2   :  { %13 = vsyncpa [#allocation7 + $0x1], 0 }
   0x3   :  { %14 = vsyncpa [#allocation5], 0  ;;  %s1050_s18 = smov 0   ;;  %s1052_s19 = smov 0  }
   0x4   :  { %s1054_s20 = smov 0   ;;  %s1056_s21 = smov 0  }
   0x5 LB: > { %s1069_s22 = sadd.s32 4294967295, %s1007_s21   ;;  %s1072_s23 = sadd.s32 1, %s1007_s21   ;;  %s1007_s21 = sphi %s1056_s21, %s1267_s21   ;;  %s1003_s20 = sphi %s1054_s20, %s1266_s20   ;;  %s999_s19 = sphi %s1052_s19, %s1265_s19   ;;  %s995_s18 = sphi %s1050_s18, %s1264_s18  }
   0x6   : > { %s45_s24 = ssub.s32 %s1007_s21, %s1072_s23  ;;  %s48_s25 = sadd.s32 1, %s1003_s20 }
   0x7   : > { %p46_p0 = scmp.eq.s32.totalorder %s45_s24, 0  ;;  %p55_p1 = scmp.ne.s32.totalorder %s1003_s20, %s999_s19 }
   0x8   : > { %p56_p2 = scmp.eq.s32.totalorder %s1007_s21, 0  ;;  %p61_p3 = scmp.ne.s32.totalorder %s999_s19, %s995_s18 }
   0x9   : > { %s1082_s26 = scalar_select %p46_p0, %s1003_s20, %s48_s25  }
   0xa   : > { %p1084_p4 = por %p56_p2, %p55_p1  ;;  %p1247_p5 = scmp.eq.s32.totalorder %s1069_s22, 0 }
   0xb   : > { %p657_p6 = scmp.ge.s32.totalorder %s1007_s21, 1  ;;  %p156_p7 = scmp.lt.s32.totalorder %s1007_s21, 5 }
   0xc   : > { %p1093_p8 = por %p1247_p5, %p61_p3  ;;  %s1009_s30 = smov [#allocation8]  }
   0xd   : > { %p1098_p10 = pnand %p657_p6, %p156_p7  ;;  %s184_s6 = sshll.u32 %s1009_s30, 4  ;;  %s185_s6 = int_to_ptr.vmem [resolvable:$true] %s184_s6 }
   0xe   : > { %s1252_s28 = scalar_select %p1093_p8, 1, 0 }
   0xf   : > { %s1253_s29 = scalar_select %p1098_p10, 1, 0 }
  0x10   : > { %p771_p11 = pneg %p1098_p10  ;;  %p784_p13 = scmp.lt.s32.totalorder %s1007_s21, 4 }
  0x11   : > { %s868_s9 = scalar_lea.vmem %s185_s6, 1024  ;;  %p876_p7 = scmp.lt.s32.totalorder %s185_s6, %s185_s6 }
  0x12   : > { %p1106_p12 = pnand %p771_p11, %p1247_p5  ;;  %p1113_p0 = pnand %p784_p13, %p1084_p4 }
  0x13   : > { %p869_p2 = scmp.ne.s32.totalorder %s185_s6, %s868_s9  ;;  %p877_p11 = scmp.lt.s32.totalorder %s868_s9, %s868_s9 }
  0x14   : > { %p859_p1 = pneg %p1106_p12 }
  0x15   : > { %p878_p9 = por %p877_p11, %p876_p7 }
  0x16   : > { %p871_p3 = pnand %p869_p2, %p859_p1 }
  0x18   : > { %p872_p6 = pneg %p871_p3 }
  0x1a   : > { %p879_p5 = pnand %p878_p9, %p872_p6 }
  0x1c   : > { %882 = shalt.err (!%p879_p5)
}
  0x1d   : > { %s1248_s10 = smov 64   ;;  %s1011_s11 = smov 4  }
  0x1e   : > { %777 = dma.hbm_to_vmem [thread:$0]  (!%p1106_p12), %s1244_s3, 1024, %s185_s6, [#allocation7], %s1248_s10, %s1248_s10, %s1011_s11  }
  0x1f   : > { %s1012_s14 = smov [#allocation3]  }
  0x20   : > { %s168_s15 = sshll.u32 %s1012_s14, 4  ;;  %s169_s15 = int_to_ptr.vmem [resolvable:$true] %s168_s15 }
  0x21   : > { %s894_s16 = scalar_lea.vmem %s169_s15, 512  ;;  %p902_p13 = scmp.lt.s32.totalorder %s169_s15, %s169_s15 }
  0x22   : > { %p895_p4 = scmp.ne.s32.totalorder %s169_s15, %s894_s16  ;;  %p903_p2 = scmp.lt.s32.totalorder %s894_s16, %s894_s16 }
  0x24   : > { %p897_p5 = pnand %p895_p4, %p859_p1  ;;  %p904_p3 = por %p903_p2, %p902_p13 }
  0x26   : > { %p898_p9 = pneg %p897_p5 }
  0x28   : > { %p905_p6 = pnand %p904_p3, %p898_p9 }
  0x2a   : > { %908 = shalt.err (!%p905_p6)
}
  0x2b   : > { %s1013_s17 = smov 128   ;;  %s1014_s18 = smov 8  }
  0x2c   : > { %774 = dma.hbm_to_vmem [thread:$0]  (!%p1106_p12), %s1241_s0, 512, %s169_s15, [#allocation4], %s1013_s17, %s1013_s17, %s1014_s18  }
  0x2d   : > { %s201_s27 = sand.u32 1, %s1007_s21   ;;  %s203_s30 = sand.u32 1, %s1003_s20  }
  0x2e   : > { %s661_s6 = sshll.u32 %s203_s30, 7  ;;  %s704_s9 = sshll.u32 %s1007_s21, 11 }
  0x2f   : > { %s1144_s14 = scalar_lea.hbm %s1242_s1, %s704_s9  ;;  %s205_s16 = scalar_lea.vmem [#allocation6], %s661_s6 }
  0x30   : > { %s212_s10 = sshll.u32 %s205_s16, 4  ;;  %s1148_s7 = scalar_lea.sflag [#allocation7], %s201_s27  ;;  %s1146_s10 = int_to_ptr.vmem [resolvable:$true] %s212_s10 }
  0x31   : > { %s909_s24 = scalar_lea.hbm %s1144_s14, 2048  ;;  %p911_p1 = pneg %p1113_p0 }
  0x32   : > { %p910_p12 = scmp.ne.s32.totalorder %s1144_s14, %s909_s24  ;;  %s914_s17 = scalar_lea.hbm %s1242_s1, 8192 }
  0x33   : > { %p915_p4 = scmp.lt.s32.totalorder %s1144_s14, %s1242_s1  ;;  %p916_p5 = scmp.lt.s32.totalorder %s914_s17, %s909_s24 }
  0x34   : > { %p912_p7 = pnand %p911_p1, %p910_p12 }
  0x35   : > { %p917_p9 = por %p916_p5, %p915_p4 }
  0x36   : > { %p913_p11 = pneg %p912_p7 }
  0x38   : > { %p918_p13 = pnand %p917_p9, %p913_p11 }
  0x3a   : > { %921 = shalt.err (!%p918_p13)
}
  0x3b   : > { %s922_s27 = scalar_lea.vmem %s1146_s10, 2048  ;;  %s1015_s30 = smov [#allocation6]  }
  0x3c   : > { %p923_p2 = scmp.ne.s32.totalorder %s1146_s10, %s922_s27  ;;  %s927_s6 = sshll.u32 %s1015_s30, 4  ;;  %s928_s6 = int_to_ptr.vmem [resolvable:$false] %s927_s6 }
  0x3d   : > { %s929_s9 = scalar_lea.vmem %s928_s6, 4096  ;;  %p930_p12 = scmp.lt.s32.totalorder %s1146_s10, %s928_s6 }
  0x3e   : > { %p925_p3 = pnand %p923_p2, %p911_p1  ;;  %p931_p7 = scmp.lt.s32.totalorder %s929_s9, %s922_s27 }
  0x40   : > { %p926_p6 = pneg %p925_p3  ;;  %p932_p8 = por %p931_p7, %p930_p12 }
  0x42   : > { %p933_p10 = pnand %p932_p8, %p926_p6 }
  0x44   : > { %936 = shalt.err (!%p933_p10)
}
  0x45   : > { %s1256_s12 = smov 64   ;;  %p1257_p1 = scmp.ne.s32.totalorder %s1253_s29, 0 }
  0x46   : > { %781 = dma.hbm_to_vmem [thread:$0]  (!%p1113_p0), %s1144_s14, 2048, %s1146_s10, %s1148_s7, %s1256_s12, %s1256_s12, %s1011_s11  }
  0x47   : > { %224 = sbr.rel (%p1257_p1) target bundleno = 574 (0x23e), region = 40  ;;  %p1258_p11 = scmp.eq.s32.totalorder (!%p1257_p1), %s1069_s22, 0 }
  0x4c   : > { %978 = dma.done.wait (%p1258_p11), [#allocation4], 512   ;;  %p1259_p4 = pmov %p1258_p11 }
  0x4d   : > { %s230_s8 = sand.u32 1, %s1069_s22   ;;  %s232_s13 = sand.u32 1, %s999_s19  }
  0x4e   : > { %980 = vsyncadd (%p1259_p4), [#allocation4], 4294966784  ;;  %s666_s16 = sshll.u32 %s232_s13, 7  ;;  %s231_s24 = scalar_lea.sflag [#allocation7], %s230_s8 }
  0x4f   : > { %s1180_s21 = scalar_lea.vmem [#allocation6], %s666_s16  ;;  %p1260_p8 = scmp.ne.s32.totalorder %s1252_s28, 0 }
  0x51   : > { %982 = dma.done.wait (%p1260_p8), %s231_s24, 2048  }
  0x52   : > { %984 = vsyncadd (%p1260_p8), %s231_s24, 4294965248  ;;  %p1261_p10 = pmov %p1259_p4 }
  0x53   : > { %p1262_p0 = pmov %p1259_p4 }
  0x54   : > { %986 = dma.done.wait (%p1261_p10), [#allocation7], 1024  }
  0x55   : > { %988 = vsyncadd (%p1262_p0), [#allocation7], 4294966272  ;;  %p1263_p5 = scmp.ne.s32.totalorder %s1069_s22, 0 }
  0x57   : > { %265 = sbr.rel (%p1263_p5) target bundleno = 94 (0x5e), region = 56 }
  0x5c   : > { %v1016_v0 = vmov 0.0  }
  0x5d   : > { %266 = vst [vmem:[#allocation2] sm:$0xff] %v1016_v0 }
  0x5e PF: > { %v831_v1 = vld [vmem:[%s1180_s21 + $0x78] sm:$0xff]   ;;  %v833_v3 = vld [vmem:[%s1180_s21 + $0x70] sm:$0xff]   ;;  %v835_v5 = vld [vmem:[%s1180_s21 + $0x68] sm:$0xff]   ;;  %s705_s28 = sshll.u32 %s1069_s22, 3  ;;  %p689_p9 = scmp.ne.s32.totalorder %s1069_s22, 3 }
  0x5f   : > { %v832_v2 = vld [vmem:[%s1180_s21 + $0x38] sm:$0xff]   ;;  %706 = vmatprep.subr.bf16.mxu0 %v831_v1  ;;  %v834_v4 = vld [vmem:[%s1180_s21 + $0x30] sm:$0xff]   ;;  %v836_v6 = vld [vmem:[%s1180_s21 + $0x28] sm:$0xff]   ;;  %s269_s29 = scalar_lea.vmem [#allocation3], %s705_s28 }
  0x60   : > { %707 = vmatpush3.bf16.msra.mxu0 %v832_v2  ;;  %v837_v7 = vld [vmem:[%s1180_s21 + $0x60] sm:$0xff]   ;;  %v839_v9 = vld [vmem:[%s1180_s21 + $0x58] sm:$0xff]   ;;  %v841_v11 = vld [vmem:[%s1180_s21 + $0x50] sm:$0xff]  }
  0x61   : > { %708 = vmatprep.subr.bf16.mxu0 %v833_v3  ;;  %v838_v8 = vld [vmem:[%s1180_s21 + $0x20] sm:$0xff]   ;;  %v840_v10 = vld [vmem:[%s1180_s21 + $0x18] sm:$0xff]   ;;  %v842_v14 = vld [vmem:[%s1180_s21 + $0x10] sm:$0xff]  }
  0x62   : > { %v270_v12 = vld [vmem:[%s269_s29] sm:$0xff]  ;;  %v843_v15 = vld [vmem:[%s1180_s21 + $0x48] sm:$0xff]   ;;  %v845_v17 = vld [vmem:[%s1180_s21 + $0x40] sm:$0xff]  }
  0x63   : > { %v672_v13 = vcombine.high %v270_v12, %v270_v12  ;;  %v844_v16 = vld [vmem:[%s1180_s21 + $0x8] sm:$0xff]   ;;  %v846_v18 = vld [vmem:[%s1180_s21] sm:$0xff]   ;;  %v671_v19 = vcombine.low %v270_v12, %v270_v12 }
  0x64   : > { %709 = vmatpush3.bf16.msra.mxu0 %v834_v4  ;;  %v271_v21 = vld [vmem:[#allocation2] sm:$0xff] }
  0x65   : > { %710 = vmatprep.subr.bf16.mxu0 %v835_v5  ;;  %439 = vmatprep.mubr.bf16.mxu0 %v672_v13 }
  0x68   : > { %711 = vmatpush3.bf16.msra.mxu0 %v836_v6 }
  0x69   : > { %712 = vmatprep.subr.bf16.mxu0 %v837_v7 }
  0x6c   : > { %713 = vmatpush3.bf16.msra.mxu0 %v838_v8 }
  0x6d   : > { %714 = vmatprep.subr.bf16.mxu0 %v839_v9 }
  0x70   : > { %715 = vmatpush3.bf16.msra.mxu0 %v840_v10 }
  0x71   : > { %716 = vmatprep.subr.bf16.mxu0 %v841_v11 }
  0x74   : > { %717 = vmatpush3.bf16.msra.mxu0 %v842_v14 }
  0x75   : > { %718 = vmatprep.subr.bf16.mxu0 %v843_v15 }
  0x78   : > { %719 = vmatpush3.bf16.msra.mxu0 %v844_v16 }
  0x79   : > { %720 = vmatprep.subr.bf16.mxu0 %v845_v17 }
  0x7c   : > { %721 = vmatpush3.bf16.msra.mxu0 %v846_v18 }
  0x7f   : > { %440 = vmatmul.mubr.bf16.vlgmr.msra.gmra.mxu0 %v671_v19 }
 0x13f   : > { %v722_v20 = vpop.f32.mrf.mxu0 }
 0x141   : > { %v723_v22 = vpop.f32.mrf.mxu0 }
 0x142   : > { %v724_v23 = vadd.f32 %v723_v22, %v722_v20  ;;  %452 = sbr.rel (%p689_p9) target bundleno = 559 (0x22f), region = 60 }
 0x143   : > { %v725_v24 = vpop.f32.mrf.mxu0 }
 0x144   : > { %v447_v25 = vadd.f32 %v724_v23, %v271_v21 }
 0x145   : > { %v726_v26 = vpop.f32.mrf.mxu0 }
 0x146   : > { %448 = vst [vmem:[#allocation2] sm:$0xff] %v447_v25 }
 0x147   : > { %v849_v27 = vld [vmem:[#allocation8 + $0x38] sm:$0xff]   ;;  %v1017_v28 = vmov 0.0   ;;  %v850_v29 = vld [vmem:[#allocation8 + $0x30] sm:$0xff]   ;;  %vm1018_vm0 = vmmov 0   ;;  %v851_v30 = vld [vmem:[#allocation8 + $0x28] sm:$0xff]  }
 0x148   : > { %737 = vmatprep.subr.bf16.mxu0 %v1017_v28  ;;  %753 = vmatprep.mubr.msk.bf16.mxu0 %vm1018_vm0, %v1017_v28  ;;  %v852_v31 = vld [vmem:[#allocation8 + $0x20] sm:$0xff]   ;;  %v853_v32 = vld [vmem:[#allocation8 + $0x18] sm:$0xff]   ;;  %v854_v33 = vld [vmem:[#allocation8 + $0x10] sm:$0xff]  }
 0x149   : > { %738 = vmatpush3.bf16.msra.mxu0 %v849_v27  ;;  %v690_v35 = vld [vmem:[%s1243_s2] ss:$0 sm:$0xff]  ;;  %v855_v37 = vld [vmem:[#allocation8 + $0x8] sm:$0xff]   ;;  %v856_v39 = vld [vmem:[#allocation8] sm:$0xff]  }
 0x14a   : > { %739 = vmatprep.subr.bf16.mxu0 %v1017_v28  ;;  %v691_v41 = vld [vmem:[%s1245_s4] ss:$0 sm:$0xff] }
 0x14d   : > { %740 = vmatpush3.bf16.msra.mxu0 %v850_v29  ;;  %v453_v34 = vld [vmem:[#allocation2] sm:$0xff] }
 0x14e   : > { %741 = vmatprep.subr.bf16.mxu0 %v1017_v28  ;;  %v461_v36 = vadd.f32 %v690_v35, %v453_v34 }
 0x150   : > { %v462_v38 = vmax.f32 %v461_v36, 0.0 }
 0x151   : > { %742 = vmatpush3.bf16.msra.mxu0 %v851_v30 }
 0x152   : > { %743 = vmatprep.subr.bf16.mxu0 %v1017_v28  ;;  %v463_v40 = vpack.c.bf16 %v462_v38, %v462_v38 }
 0x155   : > { %744 = vmatpush3.bf16.msra.mxu0 %v852_v31 }
 0x156   : > { %745 = vmatprep.subr.bf16.mxu0 %v1017_v28 }
 0x159   : > { %746 = vmatpush3.bf16.msra.mxu0 %v853_v32 }
 0x15a   : > { %747 = vmatprep.subr.bf16.mxu0 %v1017_v28 }
 0x15d   : > { %748 = vmatpush3.bf16.msra.mxu0 %v854_v33 }
 0x15e   : > { %749 = vmatprep.subr.bf16.mxu0 %v1017_v28 }
 0x161   : > { %750 = vmatpush3.bf16.msra.mxu0 %v855_v37 }
 0x162   : > { %751 = vmatprep.subr.bf16.mxu0 %v1017_v28 }
 0x165   : > { %752 = vmatpush3.bf16.msra.mxu0 %v856_v39 }
 0x168   : > { %754 = vmatmul.mubr.bf16.vlgmr.msra.gmra.mxu0 %v463_v40 }
 0x228   : > { %v569_v42 = vpop.f32.mrf.mxu0 }
 0x229   : > { %v570_v43 = vadd.f32 %v691_v41, %v569_v42 }
 0x22a   : > { %v755_v44 = vpop.f32.mrf.mxu0 }
 0x22b   : > { %575 = vst [vmem:[#allocation9] sm:$0xff] %v570_v43 }
 0x22c   : > { %v572_v45 = vpop.f32.mrf.mxu0 }
 0x22e   : > { %v756_v46 = vpop.f32.mrf.mxu0 }
 0x22f PF: > { %p787_p13 = scmp.eq.s32.totalorder %s1069_s22, 3  ;;  %s1019_s15 = smov [#allocation9]  }
 0x230   : > { %s583_s17 = sshll.u32 %s1019_s15, 4  ;;  %s584_s17 = int_to_ptr.vmem [resolvable:$true] %s583_s17 }
 0x231   : > { %s937_s18 = scalar_lea.vmem %s584_s17, 128  ;;  %p944_p12 = scmp.lt.s32.totalorder %s584_s17, %s584_s17 }
 0x232   : > { %p938_p2 = scmp.ne.s32.totalorder %s584_s17, %s937_s18  ;;  %p945_p7 = scmp.lt.s32.totalorder %s937_s18, %s937_s18 }
 0x234   : > { %p939_p3 = pnand %p938_p2, %p787_p13  ;;  %p946_p1 = por %p945_p7, %p944_p12 }
 0x236   : > { %p940_p6 = pneg %p939_p3 }
 0x238   : > { %p947_p11 = pnand %p946_p1, %p940_p6 }
 0x23a   : > { %950 = shalt.err (!%p947_p11)
}
 0x23b   : > { %768 = dma.vmem_to_hbm [thread:$0]  (%p787_p13), %s584_s17, 128, %s1246_s5, [#allocation5]  }
 0x23c   : > { %990 = dma.done.wait (%p787_p13), [#allocation5], 128  }
 0x23d   : > { %992 = vsyncadd (%p787_p13), [#allocation5], 4294967168 }
 0x23e PF: > { %p17_p4 = scmp.ge.s32.totalorder %s1072_s23, 6   ;;  %s1264_s18 = smov %s999_s19 }
 0x23f   : > { %s1265_s19 = smov %s1003_s20  ;;  %s1266_s20 = smov %s1082_s26 }
 0x240   : > { %s1267_s21 = smov %s1072_s23  ;;  %19 = sbr.rel (!%p17_p4) target bundleno = 5 (0x5), region = 95 }
 0x245   :  { %596 = vsyncpa [#allocation4], 1 }
 0x246   :  { %598 = vsyncpa [#allocation4 + $0x1], 1 }
 0x247   :  { %599 = vsyncpa [#allocation7], 1 }
 0x248   :  { %601 = vsyncpa [#allocation7 + $0x1], 1 }
 0x249   :  { %602 = vsyncpa [#allocation5], 1 }
 0x24a   :  { %604 = vsyncpa [#allocation5 + $0x1], 1 }

</bundles_post_ra>
